<compile_context>
chip_gen: v7x
topology: tpu7x:2x2x1
jax: 0.10.0
libtpu: 0.0.40
codegen_flags: <defaults>
</compile_context>

<pallas_src>
import functools

import jax
import jax.numpy as jnp
from jax.experimental import pallas as pl
from jax.experimental.pallas import tpu as pltpu

_EPS = 1e-5

# Packed (8, W) f32 row layout:
#   0: gamma1  1: beta1   2: gamma2  3: beta2
#   4: gamma3  5: beta3   6: fc4 bias  7: head bias (lane-padded with zeros)


def _round_up(n, m):
    return ((n + m - 1) // m) * m


def mtl_kernel(x_ref, w_ref, p_ref, out_ref, *, offs, d_in_pad, width):
    """Whole forward pass fused in VMEM (shapes are small)."""

    def mm(h, off, k):
        # bf16 MXU matmul, f32 accumulation; static 16-row-aligned weight view.
        return jnp.dot(h.astype(jnp.bfloat16), w_ref[off:off + k, :],
                       preferred_element_type=jnp.float32)

    def row(r):
        return p_ref[r:r + 1, :]                 # (1, W) f32, static slice

    inv_b = 1.0 / x_ref.shape[0]

    def bn_relu(h, g_row, be_row):
        # Training-mode BatchNorm1d: one-pass batch stats (biased variance),
        # affine folded into scale/shift.  All f32.
        mu = jnp.sum(h, axis=0, keepdims=True) * inv_b
        ex2 = jnp.sum(h * h, axis=0, keepdims=True) * inv_b
        var = ex2 - mu * mu
        scale = row(g_row) * jax.lax.rsqrt(var + _EPS)
        shift = row(be_row) - mu * scale
        return jnp.maximum(h * scale + shift, 0.0)

    h = x_ref[...].astype(jnp.float32)
    # fc1..fc3 biases omitted: batch-mean subtraction cancels them exactly.
    h = bn_relu(mm(h, offs[0], d_in_pad), 0, 1)
    h = bn_relu(mm(h, offs[1], width), 2, 3)
    h = bn_relu(mm(h, offs[2], width), 4, 5)
    # Last shared layer has no BN; forward applies F.relu on top of shared(x).
    h = jnp.maximum(mm(h, offs[3], width) + row(6), 0.0)
    # All task heads fused into one matmul + one lane-dense contiguous store.
    out_ref[...] = mm(h, offs[4], width) + row(7)


def init_params(key, d_in, shapes, tasks):
    """Deterministic synthetic parameters (PyTorch Linear-style uniform init).

    Returns:
      wcat:   (d_in_pad + 4*W, W) bf16  -- fc1..fc4 + lane-padded head weight
      packed: (8, W) f32                -- gammas/betas, fc4 bias, head bias
      ref:    dict of unpadded f32 params for the pure-JAX reference
    """
    width = shapes[0]
    assert all(s == width for s in shapes) and width % 128 == 0, (
        "uniform, lane-aligned hidden widths required for weight concatenation")

    dims = [d_in] + list(shapes)
    ws, bs = [], []
    for s in range(len(shapes)):
        fan_in, fan_out = dims[s], dims[s + 1]
        key, kw, kb = jax.random.split(key, 3)
        bound = 1.0 / float(fan_in ** 0.5)
        ws.append(jax.random.uniform(kw, (fan_in, fan_out), jnp.float32,
                                     -bound, bound))
        bs.append(jax.random.uniform(kb, (fan_out,), jnp.float32, -bound, bound))
    gs = [jnp.ones((width,), jnp.float32)] * 3       # BN gamma (fresh model)
    bes = [jnp.zeros((width,), jnp.float32)] * 3     # BN beta

    # Task heads: torch.manual_seed(7) before each head => identical heads.
    hkey = jax.random.PRNGKey(7)
    kw, kb = jax.random.split(hkey)
    bound = 1.0 / float(shapes[-1] ** 0.5)
    hw1 = jax.random.uniform(kw, (shapes[-1], 2), jnp.float32, -bound, bound)
    hb1 = jax.random.uniform(kb, (2,), jnp.float32, -bound, bound)
    hw = jnp.concatenate([hw1] * tasks, axis=1)      # (W, tasks*2)
    hb = jnp.concatenate([hb1] * tasks, axis=0)      # (tasks*2,)

    # --- kernel-side packing ---
    d_in_pad = _round_up(d_in, 16)                   # bf16 sublane-tile aligned
    w1p = jnp.zeros((d_in_pad, width), jnp.float32).at[:d_in, :].set(ws[0])
    hwp = jnp.zeros((width, width), jnp.float32).at[:, :tasks * 2].set(hw)
    wcat = jnp.concatenate([w1p, ws[1], ws[2], ws[3], hwp],
                           axis=0).astype(jnp.bfloat16)

    packed = jnp.zeros((8, width), jnp.float32)
    for r, v in enumerate([gs[0], bes[0], gs[1], bes[1], gs[2], bes[2], bs[3]]):
        packed = packed.at[r, :v.shape[0]].set(v)
    packed = packed.at[7, :hb.shape[0]].set(hb)

    ref = dict(w=ws, b=bs, g=gs, be=bes, hw=hw, hb=hb)
    return wcat, packed, ref


@jax.jit
def _mtl_forward_impl(x_pad, wcat, packed):
    batch, d_in_pad = x_pad.shape
    width = wcat.shape[1]
    offs = (0, d_in_pad, d_in_pad + width, d_in_pad + 2 * width,
            d_in_pad + 3 * width)

    flops = 2 * batch * (d_in_pad + 4 * width) * width
    bytes_accessed = (x_pad.size * 4 + wcat.size * 2 + packed.size * 4
                      + batch * width * 4)

    kernel = functools.partial(mtl_kernel, offs=offs, d_in_pad=d_in_pad,
                               width=width)
    vmem = pl.BlockSpec(memory_space=pltpu.MemorySpace.VMEM)
    return pl.pallas_call(
        kernel,
        out_shape=jax.ShapeDtypeStruct((batch, width), jnp.float32),
        in_specs=[vmem, vmem, vmem],
        out_specs=vmem,
        cost_estimate=pl.CostEstimate(
            flops=flops,
            transcendentals=3 * width,   # per-feature rsqrt (advisory)
            bytes_accessed=bytes_accessed),
    )(x_pad, wcat, packed)


def mtl_forward(x, wcat, packed, tasks):
    width = wcat.shape[1]
    d_in_pad = wcat.shape[0] - 4 * width
    pad = d_in_pad - x.shape[1]
    if pad:
        x = jnp.pad(x, ((0, 0), (0, pad)))
    out = _mtl_forward_impl(x, wcat, packed)          # (B, W) lane-dense
    return [out[:, 2 * t:2 * (t + 1)] for t in range(tasks)]


def mtl_reference(x, ref, tasks):
    """Pure-JAX reference mirroring PyTorch semantics (incl. fc1-3 biases,
    canonical mean/var BN) with the same bf16-MXU / f32-accum matmul path."""

    def lin(h, w, b):
        return jnp.dot(h.astype(jnp.bfloat16), w.astype(jnp.bfloat16),
                       preferred_element_type=jnp.float32) + b[None, :]

    def bn_relu(h, g, be):
        mu = jnp.mean(h, axis=0, keepdims=True)
        var = jnp.mean((h - mu) ** 2, axis=0, keepdims=True)
        hn = (h - mu) / jnp.sqrt(var + _EPS) * g[None, :] + be[None, :]
        return jnp.maximum(hn, 0.0)

    h = x
    for i in range(3):
        h = bn_relu(lin(h, ref["w"][i], ref["b"][i]), ref["g"][i], ref["be"][i])
    h = jnp.maximum(lin(h, ref["w"][3], ref["b"][3]), 0.0)
    return [lin(h, ref["hw"][:, 2 * t:2 * (t + 1)], ref["hb"][2 * t:2 * (t + 1)])
            for t in range(tasks)]


if __name__ == "__main__":
    # Small shapes consistent with the module structure.
    batch, d_in, tasks = 8, 32, 2
    shapes = [128, 128, 128, 128]

    key = jax.random.PRNGKey(0)
    key, kx = jax.random.split(key)
    x = jax.random.normal(kx, (batch, d_in), jnp.float32)
    wcat, packed, ref = init_params(key, d_in, shapes, tasks)

    outs = mtl_forward(x, wcat, packed, tasks)
    outs = [jax.block_until_ready(o) for o in outs]

    refs = mtl_reference(x, ref, tasks)
    for o, r in zip(outs, refs):
        assert o.shape == (batch, 2)
        if not jnp.allclose(o, r, atol=2e-3, rtol=2e-3):
            raise AssertionError("Pallas output mismatch vs reference")

    print("KERNEL_OK")
</pallas_src>

<mosaic_0001>
module attributes {stable_mosaic.version = 11 : i64} {
  func.func @mtl_kernel(%arg0: memref<8x32xf32, #tpu.memory_space<vmem>>, %arg1: memref<544x128xbf16, #tpu.memory_space<vmem>>, %arg2: memref<8x128xf32, #tpu.memory_space<vmem>>, %arg3: memref<8x128xf32, #tpu.memory_space<vmem>>) attributes {dimension_semantics = [], scalar_prefetch = 0 : i64, scratch_operands = 0 : i64, tpu.core_type = #tpu.core_type<tc>} {
    %c0 = arith.constant 0 : index
    %c0_0 = arith.constant 0 : index
    %0 = vector.load %arg0[%c0, %c0_0] : memref<8x32xf32, #tpu.memory_space<vmem>>, vector<8x32xf32>
    %1 = arith.truncf %0 : vector<8x32xf32> to vector<8x32xbf16>
    %c0_1 = arith.constant 0 : index
    %c0_2 = arith.constant 0 : index
    %2 = vector.load %arg1[%c0_1, %c0_2] : memref<544x128xbf16, #tpu.memory_space<vmem>>, vector<32x128xbf16>
    %cst = arith.constant dense<0.000000e+00> : vector<8x128xf32>
    %3 = tpu.matmul %1, %2, %cst {dimension_numbers = #tpu.dot_dimension_numbers<[1], [0], [0], [1], [0, 0, 1, 1], [], []>} : vector<8x32xbf16>, vector<32x128xbf16>, vector<8x128xf32> -> vector<8x128xf32>
    %cst_3 = arith.constant dense<0.000000e+00> : vector<128xf32>
    %4 = vector.multi_reduction <add>, %3, %cst_3 [0] : vector<8x128xf32> to vector<128xf32>
    %5 = vector.shape_cast %4 : vector<128xf32> to vector<1x128xf32>
    %cst_4 = arith.constant 1.250000e-01 : f32
    %6 = vector.broadcast %cst_4 : f32 to vector<1x128xf32>
    %7 = arith.mulf %5, %6 : vector<1x128xf32>
    %8 = arith.mulf %3, %3 : vector<8x128xf32>
    %cst_5 = arith.constant dense<0.000000e+00> : vector<128xf32>
    %9 = vector.multi_reduction <add>, %8, %cst_5 [0] : vector<8x128xf32> to vector<128xf32>
    %10 = vector.shape_cast %9 : vector<128xf32> to vector<1x128xf32>
    %cst_6 = arith.constant 1.250000e-01 : f32
    %11 = vector.broadcast %cst_6 : f32 to vector<1x128xf32>
    %12 = arith.mulf %10, %11 : vector<1x128xf32>
    %13 = arith.mulf %7, %7 : vector<1x128xf32>
    %14 = arith.subf %12, %13 : vector<1x128xf32>
    %c0_7 = arith.constant 0 : index
    %c0_8 = arith.constant 0 : index
    %15 = vector.load %arg2[%c0_7, %c0_8] : memref<8x128xf32, #tpu.memory_space<vmem>>, vector<1x128xf32>
    %cst_9 = arith.constant 9.99999974E-6 : f32
    %16 = vector.broadcast %cst_9 : f32 to vector<1x128xf32>
    %17 = arith.addf %14, %16 : vector<1x128xf32>
    %18 = math.rsqrt %17 : vector<1x128xf32>
    %19 = arith.mulf %15, %18 : vector<1x128xf32>
    %c1 = arith.constant 1 : index
    %c0_10 = arith.constant 0 : index
    %20 = vector.load %arg2[%c1, %c0_10] : memref<8x128xf32, #tpu.memory_space<vmem>>, vector<1x128xf32>
    %21 = arith.mulf %7, %19 : vector<1x128xf32>
    %22 = arith.subf %20, %21 : vector<1x128xf32>
    %23 = vector.broadcast %19 : vector<1x128xf32> to vector<8x128xf32>
    %24 = arith.mulf %3, %23 : vector<8x128xf32>
    %25 = vector.broadcast %22 : vector<1x128xf32> to vector<8x128xf32>
    %26 = arith.addf %24, %25 : vector<8x128xf32>
    %cst_11 = arith.constant 0.000000e+00 : f32
    %27 = vector.broadcast %cst_11 : f32 to vector<8x128xf32>
    %28 = arith.maximumf %26, %27 : vector<8x128xf32>
    %29 = arith.truncf %28 : vector<8x128xf32> to vector<8x128xbf16>
    %c32 = arith.constant 32 : index
    %c0_12 = arith.constant 0 : index
    %30 = vector.load %arg1[%c32, %c0_12] : memref<544x128xbf16, #tpu.memory_space<vmem>>, vector<128x128xbf16>
    %cst_13 = arith.constant dense<0.000000e+00> : vector<8x128xf32>
    %31 = tpu.matmul %29, %30, %cst_13 {dimension_numbers = #tpu.dot_dimension_numbers<[1], [0], [0], [1], [0, 0, 1, 1], [], []>} : vector<8x128xbf16>, vector<128x128xbf16>, vector<8x128xf32> -> vector<8x128xf32>
    %cst_14 = arith.constant dense<0.000000e+00> : vector<128xf32>
    %32 = vector.multi_reduction <add>, %31, %cst_14 [0] : vector<8x128xf32> to vector<128xf32>
    %33 = vector.shape_cast %32 : vector<128xf32> to vector<1x128xf32>
    %cst_15 = arith.constant 1.250000e-01 : f32
    %34 = vector.broadcast %cst_15 : f32 to vector<1x128xf32>
    %35 = arith.mulf %33, %34 : vector<1x128xf32>
    %36 = arith.mulf %31, %31 : vector<8x128xf32>
    %cst_16 = arith.constant dense<0.000000e+00> : vector<128xf32>
    %37 = vector.multi_reduction <add>, %36, %cst_16 [0] : vector<8x128xf32> to vector<128xf32>
    %38 = vector.shape_cast %37 : vector<128xf32> to vector<1x128xf32>
    %cst_17 = arith.constant 1.250000e-01 : f32
    %39 = vector.broadcast %cst_17 : f32 to vector<1x128xf32>
    %40 = arith.mulf %38, %39 : vector<1x128xf32>
    %41 = arith.mulf %35, %35 : vector<1x128xf32>
    %42 = arith.subf %40, %41 : vector<1x128xf32>
    %c2 = arith.constant 2 : index
    %c0_18 = arith.constant 0 : index
    %43 = vector.load %arg2[%c2, %c0_18] : memref<8x128xf32, #tpu.memory_space<vmem>>, vector<1x128xf32>
    %cst_19 = arith.constant 9.99999974E-6 : f32
    %44 = vector.broadcast %cst_19 : f32 to vector<1x128xf32>
    %45 = arith.addf %42, %44 : vector<1x128xf32>
    %46 = math.rsqrt %45 : vector<1x128xf32>
    %47 = arith.mulf %43, %46 : vector<1x128xf32>
    %c3 = arith.constant 3 : index
    %c0_20 = arith.constant 0 : index
    %48 = vector.load %arg2[%c3, %c0_20] : memref<8x128xf32, #tpu.memory_space<vmem>>, vector<1x128xf32>
    %49 = arith.mulf %35, %47 : vector<1x128xf32>
    %50 = arith.subf %48, %49 : vector<1x128xf32>
    %51 = vector.broadcast %47 : vector<1x128xf32> to vector<8x128xf32>
    %52 = arith.mulf %31, %51 : vector<8x128xf32>
    %53 = vector.broadcast %50 : vector<1x128xf32> to vector<8x128xf32>
    %54 = arith.addf %52, %53 : vector<8x128xf32>
    %cst_21 = arith.constant 0.000000e+00 : f32
    %55 = vector.broadcast %cst_21 : f32 to vector<8x128xf32>
    %56 = arith.maximumf %54, %55 : vector<8x128xf32>
    %57 = arith.truncf %56 : vector<8x128xf32> to vector<8x128xbf16>
    %c160 = arith.constant 160 : index
    %c0_22 = arith.constant 0 : index
    %58 = vector.load %arg1[%c160, %c0_22] : memref<544x128xbf16, #tpu.memory_space<vmem>>, vector<128x128xbf16>
    %cst_23 = arith.constant dense<0.000000e+00> : vector<8x128xf32>
    %59 = tpu.matmul %57, %58, %cst_23 {dimension_numbers = #tpu.dot_dimension_numbers<[1], [0], [0], [1], [0, 0, 1, 1], [], []>} : vector<8x128xbf16>, vector<128x128xbf16>, vector<8x128xf32> -> vector<8x128xf32>
    %cst_24 = arith.constant dense<0.000000e+00> : vector<128xf32>
    %60 = vector.multi_reduction <add>, %59, %cst_24 [0] : vector<8x128xf32> to vector<128xf32>
    %61 = vector.shape_cast %60 : vector<128xf32> to vector<1x128xf32>
    %cst_25 = arith.constant 1.250000e-01 : f32
    %62 = vector.broadcast %cst_25 : f32 to vector<1x128xf32>
    %63 = arith.mulf %61, %62 : vector<1x128xf32>
    %64 = arith.mulf %59, %59 : vector<8x128xf32>
    %cst_26 = arith.constant dense<0.000000e+00> : vector<128xf32>
    %65 = vector.multi_reduction <add>, %64, %cst_26 [0] : vector<8x128xf32> to vector<128xf32>
    %66 = vector.shape_cast %65 : vector<128xf32> to vector<1x128xf32>
    %cst_27 = arith.constant 1.250000e-01 : f32
    %67 = vector.broadcast %cst_27 : f32 to vector<1x128xf32>
    %68 = arith.mulf %66, %67 : vector<1x128xf32>
    %69 = arith.mulf %63, %63 : vector<1x128xf32>
    %70 = arith.subf %68, %69 : vector<1x128xf32>
    %c4 = arith.constant 4 : index
    %c0_28 = arith.constant 0 : index
    %71 = vector.load %arg2[%c4, %c0_28] : memref<8x128xf32, #tpu.memory_space<vmem>>, vector<1x128xf32>
    %cst_29 = arith.constant 9.99999974E-6 : f32
    %72 = vector.broadcast %cst_29 : f32 to vector<1x128xf32>
    %73 = arith.addf %70, %72 : vector<1x128xf32>
    %74 = math.rsqrt %73 : vector<1x128xf32>
    %75 = arith.mulf %71, %74 : vector<1x128xf32>
    %c5 = arith.constant 5 : index
    %c0_30 = arith.constant 0 : index
    %76 = vector.load %arg2[%c5, %c0_30] : memref<8x128xf32, #tpu.memory_space<vmem>>, vector<1x128xf32>
    %77 = arith.mulf %63, %75 : vector<1x128xf32>
    %78 = arith.subf %76, %77 : vector<1x128xf32>
    %79 = vector.broadcast %75 : vector<1x128xf32> to vector<8x128xf32>
    %80 = arith.mulf %59, %79 : vector<8x128xf32>
    %81 = vector.broadcast %78 : vector<1x128xf32> to vector<8x128xf32>
    %82 = arith.addf %80, %81 : vector<8x128xf32>
    %cst_31 = arith.constant 0.000000e+00 : f32
    %83 = vector.broadcast %cst_31 : f32 to vector<8x128xf32>
    %84 = arith.maximumf %82, %83 : vector<8x128xf32>
    %85 = arith.truncf %84 : vector<8x128xf32> to vector<8x128xbf16>
    %c288 = arith.constant 288 : index
    %c0_32 = arith.constant 0 : index
    %86 = vector.load %arg1[%c288, %c0_32] : memref<544x128xbf16, #tpu.memory_space<vmem>>, vector<128x128xbf16>
    %cst_33 = arith.constant dense<0.000000e+00> : vector<8x128xf32>
    %87 = tpu.matmul %85, %86, %cst_33 {dimension_numbers = #tpu.dot_dimension_numbers<[1], [0], [0], [1], [0, 0, 1, 1], [], []>} : vector<8x128xbf16>, vector<128x128xbf16>, vector<8x128xf32> -> vector<8x128xf32>
    %c6 = arith.constant 6 : index
    %c0_34 = arith.constant 0 : index
    %88 = vector.load %arg2[%c6, %c0_34] : memref<8x128xf32, #tpu.memory_space<vmem>>, vector<1x128xf32>
    %89 = vector.broadcast %88 : vector<1x128xf32> to vector<8x128xf32>
    %90 = arith.addf %87, %89 : vector<8x128xf32>
    %cst_35 = arith.constant 0.000000e+00 : f32
    %91 = vector.broadcast %cst_35 : f32 to vector<8x128xf32>
    %92 = arith.maximumf %90, %91 : vector<8x128xf32>
    %93 = arith.truncf %92 : vector<8x128xf32> to vector<8x128xbf16>
    %c416 = arith.constant 416 : index
    %c0_36 = arith.constant 0 : index
    %94 = vector.load %arg1[%c416, %c0_36] : memref<544x128xbf16, #tpu.memory_space<vmem>>, vector<128x128xbf16>
    %cst_37 = arith.constant dense<0.000000e+00> : vector<8x128xf32>
    %95 = tpu.matmul %93, %94, %cst_37 {dimension_numbers = #tpu.dot_dimension_numbers<[1], [0], [0], [1], [0, 0, 1, 1], [], []>} : vector<8x128xbf16>, vector<128x128xbf16>, vector<8x128xf32> -> vector<8x128xf32>
    %c7 = arith.constant 7 : index
    %c0_38 = arith.constant 0 : index
    %96 = vector.load %arg2[%c7, %c0_38] : memref<8x128xf32, #tpu.memory_space<vmem>>, vector<1x128xf32>
    %97 = vector.broadcast %96 : vector<1x128xf32> to vector<8x128xf32>
    %98 = arith.addf %95, %97 : vector<8x128xf32>
    %c0_39 = arith.constant 0 : index
    %c0_40 = arith.constant 0 : index
    %99 = vector.load %arg3[%c0_39, %c0_40] : memref<8x128xf32, #tpu.memory_space<vmem>>, vector<8x128xf32>
    tpu.vector_store %arg3[%c0_39, %c0_40], %98 {strides = array<i32>} : memref<8x128xf32, #tpu.memory_space<vmem>>, vector<8x128xf32>,
    return
  }
}

</mosaic_0001>

<bundles_post_ra>
// kernel: _mtl_forward_impl.1
= control target key start
LH: loop header
LB: loop body
LE: loop exit
PB: predicated region body
PF: predicated region fallthrough
CT: control target
= control target key end

     0   :  { %8 = vsyncpa [#allocation3], 0  ;;  %s1102_s0 = inlined_call_operand.hbm [shape: f32[8,32], index: 0, kind: input, shape index: {}]   ;;  %s1103_s1 = inlined_call_operand.hbm [shape: bf16[544,128], index: 1, kind: input, shape index: {}]   ;;  %s1104_s2 = inlined_call_operand.hbm [shape: f32[8,128], index: 2, kind: input, shape index: {}]   ;;  %s1105_s3 = inlined_call_operand.hbm [shape: f32[8,128], index: 3, kind: output, shape index: {}]  }
   0x1   :  { %9 = vsyncpa [#allocation6], 0 }
   0x2   :  { %10 = vsyncpa [#allocation4], 0  ;;  %s974_s12 = smov [#allocation5]   ;;  %s880_s16 = scalar_lea.hbm %s1103_s1, 4352 }
   0x3   :  { %s26_s13 = sshll.u32 %s974_s12, 4  ;;  %p881_p0 = scmp.ne.s32.totalorder %s1103_s1, %s880_s16  ;;  %s27_s13 = int_to_ptr.vmem [resolvable:$true] %s26_s13 }
   0x4   :  { %p884_p1 = scmp.lt.u32.totalorder %s880_s16, %s1103_s1 }
   0x6   :  { %p886_p2 = pnand %p884_p1, %p881_p0 }
   0x8   :  { %889 = shalt.err (!%p886_p2)
}
   0x9   :  { %s890_s21 = scalar_lea.vmem %s27_s13, 4352  ;;  %p895_p4 = scmp.lt.s32.totalorder %s27_s13, %s27_s13 }
   0xa   :  { %p891_p3 = scmp.ne.s32.totalorder %s27_s13, %s890_s21  ;;  %p896_p5 = scmp.lt.s32.totalorder %s890_s21, %s890_s21 }
   0xc   :  { %p897_p6 = por %p896_p5, %p895_p4 }
   0xe   :  { %p898_p7 = pnand %p897_p6, %p891_p3 }
  0x10   :  { %901 = shalt.err (!%p898_p7)
}
  0x11   :  { %s975_s22 = smov 64   ;;  %s976_s23 = smov 4  }
  0x12   :  { %32 = dma.hbm_to_vmem [thread:$0]  %s1103_s1, 4352, %s27_s13, [#allocation6], %s975_s22, %s975_s22, %s976_s23  }
  0x13   :  { %s977_s26 = smov [#allocation2]   ;;  %s978_s28 = smov [#allocation7]  }
  0x14   :  { %s17_s27 = sshll.u32 %s977_s26, 4  ;;  %s39_s29 = sshll.u32 %s978_s28, 4  ;;  %s18_s27 = int_to_ptr.vmem [resolvable:$true] %s17_s27  ;;  %s40_s29 = int_to_ptr.vmem [resolvable:$true] %s39_s29 }
  0x15   :  { %s902_s5 = scalar_lea.hbm %s1102_s0, 128 }
  0x16   :  { %p903_p8 = scmp.ne.s32.totalorder %s1102_s0, %s902_s5  ;;  %p906_p9 = scmp.lt.u32.totalorder %s902_s5, %s1102_s0 }
  0x18   :  { %p908_p10 = pnand %p906_p9, %p903_p8 }
  0x1a   :  { %911 = shalt.err (!%p908_p10)
}
  0x1b   :  { %s912_s1 = scalar_lea.vmem %s18_s27, 128  ;;  %p917_p12 = scmp.lt.s32.totalorder %s18_s27, %s18_s27 }
  0x1c   :  { %p913_p11 = scmp.ne.s32.totalorder %s18_s27, %s912_s1  ;;  %p918_p13 = scmp.lt.s32.totalorder %s912_s1, %s912_s1 }
  0x1e   :  { %p919_p0 = por %p918_p13, %p917_p12 }
  0x20   :  { %p920_p1 = pnand %p919_p0, %p913_p11 }
  0x22   :  { %923 = shalt.err (!%p920_p1)
}
  0x23   :  { %20 = dma.hbm_to_vmem [thread:$0]  %s1102_s0, 128, %s18_s27, [#allocation3]  }
  0x24   :  { %s924_s14 = scalar_lea.hbm %s1104_s2, 128 }
  0x25   :  { %p925_p2 = scmp.ne.s32.totalorder %s1104_s2, %s924_s14  ;;  %p928_p3 = scmp.lt.u32.totalorder %s924_s14, %s1104_s2 }
  0x27   :  { %p930_p4 = pnand %p928_p3, %p925_p2 }
  0x29   :  { %933 = shalt.err (!%p930_p4)
}
  0x2a   :  { %s934_s19 = scalar_lea.vmem %s40_s29, 128  ;;  %p939_p6 = scmp.lt.s32.totalorder %s40_s29, %s40_s29 }
  0x2b   :  { %p935_p5 = scmp.ne.s32.totalorder %s40_s29, %s934_s19  ;;  %p940_p7 = scmp.lt.s32.totalorder %s934_s19, %s934_s19 }
  0x2d   :  { %p941_p8 = por %p940_p7, %p939_p6 }
  0x2f   :  { %p942_p9 = pnand %p941_p8, %p935_p5 }
  0x31   :  { %945 = shalt.err (!%p942_p9)
}
  0x32   :  { %42 = dma.hbm_to_vmem [thread:$0]  %s1104_s2, 128, %s40_s29, [#allocation6]  }
  0x33   :  { %968 = dma.done.wait [#allocation3], 128  }
  0x34   :  { %969 = vsyncadd [#allocation3], 4294967168 }
  0x35   :  { %970 = dma.done.wait [#allocation6], 4480  }
  0x36   :  { %971 = vsyncadd [#allocation6], 4294962816  ;;  %v979_v0 = vmov 0.0   ;;  %vm980_vm0 = vmmov 0   ;;  %v840_v1 = vld [vmem:[#allocation5] sm:$0xff]   ;;  %v841_v2 = vld [vmem:[#allocation5 + $0x8] sm:$0xff]   ;;  %v139_v35 = vlaneseq }
  0x37   :  { %744 = vmatprep.subr.bf16.mxu0 %v979_v0  ;;  %748 = vmatprep.mubr.msk.bf16.mxu0 %vm980_vm0, %v979_v0  ;;  %v53_v3 = vld [vmem:[#allocation2] sm:$0xff]  ;;  %vm71_vm1 = vcmask 261120   ;;  %v842_v5 = vld [vmem:[#allocation5 + $0x10] sm:$0xff]   ;;  %v844_v7 = vld [vmem:[#allocation5 + $0x20] sm:$0xff]   ;;  %s981_s2 = smov [#allocation8]  }
  0x38   :  { %752 = vmatprep.subr.bf16.mxu1 %v979_v0  ;;  %768 = vmatprep.mubr.msk.bf16.mxu1 %vm980_vm0, %v979_v0  ;;  %v54_v4 = vpack.c.bf16 %v53_v3, %v53_v3  ;;  %v843_v6 = vld [vmem:[#allocation5 + $0x18] sm:$0xff]   ;;  %v845_v8 = vld [vmem:[#allocation5 + $0x28] sm:$0xff]   ;;  %v846_v9 = vld [vmem:[#allocation5 + $0x30] sm:$0xff]   ;;  %v140_v36 = vshrl.u32 %v139_v35, 7  ;;  %s658_s21 = sshll.u32 %s981_s2, 4  ;;  %s659_s21 = int_to_ptr.vmem [resolvable:$true] %s658_s21 }
  0x39   :  { %745 = vmatpush3.bf16.msra.mxu0 %v840_v1  ;;  %753 = vmatpush3.bf16.msra.mxu1 %v842_v5  ;;  %v847_v10 = vld [vmem:[#allocation5 + $0x38] sm:$0xff]   ;;  %v848_v11 = vld [vmem:[#allocation5 + $0x40] sm:$0xff]   ;;  %v849_v12 = vld [vmem:[#allocation5 + $0x48] sm:$0xff]   ;;  %s946_s22 = scalar_lea.vmem %s659_s21, 128  ;;  %p951_p11 = scmp.lt.s32.totalorder %s659_s21, %s659_s21 }
  0x3a   :  { %746 = vmatprep.subr.bf16.mxu0 %v979_v0  ;;  %754 = vmatprep.subr.bf16.mxu1 %v979_v0  ;;  %v132_v37 = vld [vmem:[#allocation7] sm:$0x1]  ;;  %v1056_v38 = vsub.s32 0, %v140_v36  ;;  %v136_v41 = vld [vmem:[#allocation7 + $0x1] sm:$0x1]  ;;  %v851_v51 = vld [vmem:[#allocation5 + $0x58] sm:$0xff]   ;;  %p947_p10 = scmp.ne.s32.totalorder %s659_s21, %s946_s22  ;;  %p952_p12 = scmp.lt.s32.totalorder %s946_s22, %s946_s22 }
  0x3b   :  { %v850_v50 = vld [vmem:[#allocation5 + $0x50] sm:$0xff]   ;;  %v852_v52 = vld [vmem:[#allocation5 + $0x60] sm:$0xff]   ;;  %v853_v53 = vld [vmem:[#allocation5 + $0x68] sm:$0xff]  }
  0x3c   :  { %v854_v54 = vld [vmem:[#allocation5 + $0x70] sm:$0xff]   ;;  %v855_v55 = vld [vmem:[#allocation5 + $0x78] sm:$0xff]   ;;  %v856_v56 = vld [vmem:[#allocation5 + $0x80] sm:$0xff]   ;;  %p953_p13 = por %p952_p12, %p951_p11 }
  0x3d   :  { %747 = vmatpush3.bf16.msra.mxu0 %v841_v2  ;;  %755 = vmatpush3.bf16.msra.mxu1 %v843_v6  ;;  %v857_v57 = vld [vmem:[#allocation5 + $0x88] sm:$0xff]   ;;  %v864_v35 = vld [vmem:[#allocation5 + $0xc0] sm:$0xff]  }
  0x3e   :  { %772 = vmatprep.subr.bf16.mxu0 %v979_v0  ;;  %756 = vmatprep.subr.bf16.mxu1 %v979_v0  ;;  %v865_v36 = vld [vmem:[#allocation5 + $0xc8] sm:$0xff]   ;;  %p954_p0 = pnand %p953_p13, %p947_p10 }
  0x40   :  { %749 = vmatmul.mubr.msk.bf16.vlgmr.msra.gmra.mrb[0].mxu0 %vm71_vm1, %v54_v4 }
  0x41   :  { %788 = vmatprep.mubr.msk.bf16.mxu0 %vm980_vm0, %v979_v0  ;;  %757 = vmatpush3.bf16.msra.mxu1 %v844_v7 }
  0x42   :  { %758 = vmatprep.subr.bf16.mxu1 %v979_v0  ;;  %773 = vmatpush3.bf16.msra.mxu0 %v850_v50 }
  0x43   :  { %774 = vmatprep.subr.bf16.mxu0 %v979_v0 }
  0x45   :  { %759 = vmatpush3.bf16.msra.mxu1 %v845_v8 }
  0x46   :  { %760 = vmatprep.subr.bf16.mxu1 %v979_v0  ;;  %775 = vmatpush3.bf16.msra.mxu0 %v851_v51 }
  0x47   :  { %776 = vmatprep.subr.bf16.mxu0 %v979_v0 }
  0x49   :  { %761 = vmatpush3.bf16.msra.mxu1 %v846_v9 }
  0x4a   :  { %762 = vmatprep.subr.bf16.mxu1 %v979_v0  ;;  %777 = vmatpush3.bf16.msra.mxu0 %v852_v52 }
  0x4b   :  { %778 = vmatprep.subr.bf16.mxu0 %v979_v0 }
  0x4d   :  { %763 = vmatpush3.bf16.msra.mxu1 %v847_v10 }
  0x4e   :  { %764 = vmatprep.subr.bf16.mxu1 %v979_v0  ;;  %779 = vmatpush3.bf16.msra.mxu0 %v853_v53 }
  0x4f   :  { %780 = vmatprep.subr.bf16.mxu0 %v979_v0 }
  0x51   :  { %765 = vmatpush3.bf16.msra.mxu1 %v848_v11 }
  0x52   :  { %766 = vmatprep.subr.bf16.mxu1 %v979_v0  ;;  %781 = vmatpush3.bf16.msra.mxu0 %v854_v54 }
  0x53   :  { %782 = vmatprep.subr.bf16.mxu0 %v979_v0 }
  0x55   :  { %767 = vmatpush3.bf16.msra.mxu1 %v849_v12 }
  0x56   :  { %792 = vmatprep.subr.bf16.mxu1 %v979_v0  ;;  %783 = vmatpush3.bf16.msra.mxu0 %v855_v55 }
  0x57   :  { %784 = vmatprep.subr.bf16.mxu0 %v979_v0 }
  0x5a   :  { %785 = vmatpush3.bf16.msra.mxu0 %v856_v56 }
  0x5b   :  { %786 = vmatprep.subr.bf16.mxu0 %v979_v0 }
  0x5e   :  { %787 = vmatpush3.bf16.msra.mxu0 %v857_v57 }
  0x5f   :  { %812 = vmatprep.subr.bf16.mxu0 %v979_v0 }
 0x113   :  { %v109_v13 = vpop.f32.mrb[0].mxu0 }
 0x114   :  { %v115_v14 = vrot.slane %v109_v13, 4  ;;  %v122_v15 = vmul.f32 %v109_v13, %v109_v13  ;;  %v750_v16 = vpop.f32.mrb[1].mxu0 }
 0x115   :  { %v112_v17 = vpop.f32.mrb[2].mxu0 }
 0x116   :  { %v116_v18 = vadd.f32 %v115_v14, %v109_v13  ;;  %v123_v19 = vrot.slane %v122_v15, 4  ;;  %v751_v20 = vpop.f32.mrb[3].mxu0  ;;  %v272_v17 = vld [vmem:[#allocation7 + $0x2] sm:$0x1] }
 0x117   :  { %v276_v20 = vld [vmem:[#allocation7 + $0x3] sm:$0x1] }
 0x118   :  { %v117_v21 = vrot.slane %v116_v18, 2  ;;  %v124_v22 = vadd.f32 %v123_v19, %v122_v15 }
 0x11a   :  { %v118_v23 = vadd.f32 %v117_v21, %v116_v18  ;;  %v125_v24 = vrot.slane %v124_v22, 2 }
 0x11c   :  { %v119_v25 = vrot.slane %v118_v23, 1  ;;  %v126_v26 = vadd.f32 %v125_v24, %v124_v22 }
 0x11e   :  { %v120_v27 = vadd.f32 %v119_v25, %v118_v23  ;;  %v127_v28 = vrot.slane %v126_v26, 1 }
 0x120   :  { %v121_v29 = vmul.f32 0.125, %v120_v27  ;;  %v128_v30 = vadd.f32 %v127_v28, %v126_v26 }
 0x122   :  { %v129_v31 = vmul.f32 0.125, %v128_v30  ;;  %v130_v32 = vmul.f32 %v121_v29, %v121_v29  ;;  %v859_v30 = vld [vmem:[#allocation5 + $0x98] sm:$0xff]  }
 0x124   :  { %v131_v33 = vsub.f32 %v129_v31, %v130_v32  ;;  %v860_v31 = vld [vmem:[#allocation5 + $0xa0] sm:$0xff]   ;;  %v861_v32 = vld [vmem:[#allocation5 + $0xa8] sm:$0xff]  }
 0x126   :  { %v133_v34 = vadd.f32 1e-05, %v131_v33  ;;  %v862_v33 = vld [vmem:[#allocation5 + $0xb0] sm:$0xff]  }
 0x128   :  { %874 = vrsqrt.f32 %v133_v34  ;;  %v863_v34 = vld [vmem:[#allocation5 + $0xb8] sm:$0xff]  }
 0x132   :  { %v875_v39 = vpop.eup %874 }
 0x133   :  { %v135_v40 = vmul.f32 %v875_v39, %v132_v37  ;;  %v866_v37 = vld [vmem:[#allocation5 + $0xd0] sm:$0xff]   ;;  %v867_v39 = vld [vmem:[#allocation5 + $0xd8] sm:$0xff]  }
 0x135   :  { %v142_v42 = vrot.slane %v135_v40, %v1056_v38  ;;  %v137_v43 = vmul.f32 %v135_v40, %v121_v29  ;;  %v858_v29 = vld [vmem:[#allocation5 + $0x90] sm:$0xff]   ;;  %v868_v40 = vld [vmem:[#allocation5 + $0xe0] sm:$0xff]  }
 0x137   :  { %v138_v44 = vsub.f32 %v136_v41, %v137_v43  ;;  %v143_v45 = vmul.f32 %v142_v42, %v109_v13  ;;  %v869_v41 = vld [vmem:[#allocation5 + $0xe8] sm:$0xff]   ;;  %v870_v42 = vld [vmem:[#allocation5 + $0xf0] sm:$0xff]   ;;  %v871_v43 = vld [vmem:[#allocation5 + $0xf8] sm:$0xff]  }
 0x139   :  { %v147_v46 = vrot.slane %v138_v44, %v1056_v38 }
 0x13b   :  { %v148_v47 = vadd.f32 %v147_v46, %v143_v45 }
 0x13d   :  { %v149_v48 = vmax.f32 %v148_v47, 0.0 }
 0x13f   :  { %v150_v49 = vpack.c.bf16 %v149_v48, %v149_v48 }
 0x141   :  { %769 = vmatmul.mubr.bf16.vlgmr.msra.gmra.mrb[0].mxu1 %v150_v49 }
 0x142   :  { %808 = vmatprep.mubr.msk.bf16.mxu1 %vm980_vm0, %v979_v0  ;;  %793 = vmatpush3.bf16.msra.mxu1 %v858_v29 }
 0x143   :  { %794 = vmatprep.subr.bf16.mxu1 %v979_v0 }
 0x146   :  { %795 = vmatpush3.bf16.msra.mxu1 %v859_v30 }
 0x147   :  { %796 = vmatprep.subr.bf16.mxu1 %v979_v0 }
 0x14a   :  { %797 = vmatpush3.bf16.msra.mxu1 %v860_v31 }
 0x14b   :  { %798 = vmatprep.subr.bf16.mxu1 %v979_v0 }
 0x14e   :  { %799 = vmatpush3.bf16.msra.mxu1 %v861_v32 }
 0x14f   :  { %800 = vmatprep.subr.bf16.mxu1 %v979_v0 }
 0x152   :  { %801 = vmatpush3.bf16.msra.mxu1 %v862_v33 }
 0x153   :  { %802 = vmatprep.subr.bf16.mxu1 %v979_v0 }
 0x156   :  { %803 = vmatpush3.bf16.msra.mxu1 %v863_v34 }
 0x157   :  { %804 = vmatprep.subr.bf16.mxu1 %v979_v0 }
 0x15a   :  { %805 = vmatpush3.bf16.msra.mxu1 %v864_v35 }
 0x15b   :  { %806 = vmatprep.subr.bf16.mxu1 %v979_v0 }
 0x15e   :  { %807 = vmatpush3.bf16.msra.mxu1 %v865_v36 }
 0x214   :  { %v249_v58 = vpop.f32.mrb[0].mxu1 }
 0x215   :  { %v255_v59 = vrot.slane %v249_v58, 4  ;;  %v262_v60 = vmul.f32 %v249_v58, %v249_v58  ;;  %v770_v61 = vpop.f32.mrb[1].mxu1 }
 0x216   :  { %v252_v62 = vpop.f32.mrb[2].mxu1 }
 0x217   :  { %v256_v63 = vadd.f32 %v255_v59, %v249_v58  ;;  %v263_v1 = vrot.slane %v262_v60, 4  ;;  %v771_v2 = vpop.f32.mrb[3].mxu1 }
 0x219   :  { %v257_v3 = vrot.slane %v256_v63, 2  ;;  %v264_v4 = vadd.f32 %v263_v1, %v262_v60 }
 0x21b   :  { %v258_v5 = vadd.f32 %v257_v3, %v256_v63  ;;  %v265_v6 = vrot.slane %v264_v4, 2  ;;  %v412_v3 = vld [vmem:[#allocation7 + $0x4] sm:$0x1] }
 0x21d   :  { %v259_v7 = vrot.slane %v258_v5, 1  ;;  %v266_v8 = vadd.f32 %v265_v6, %v264_v4  ;;  %v416_v6 = vld [vmem:[#allocation7 + $0x5] sm:$0x1] }
 0x21f   :  { %v260_v9 = vadd.f32 %v259_v7, %v258_v5  ;;  %v267_v10 = vrot.slane %v266_v8, 1 }
 0x221   :  { %v261_v11 = vmul.f32 0.125, %v260_v9  ;;  %v268_v12 = vadd.f32 %v267_v10, %v266_v8 }
 0x223   :  { %v269_v13 = vmul.f32 0.125, %v268_v12  ;;  %v270_v14 = vmul.f32 %v261_v11, %v261_v11 }
 0x225   :  { %v271_v15 = vsub.f32 %v269_v13, %v270_v14 }
 0x227   :  { %v273_v16 = vadd.f32 1e-05, %v271_v15  ;;  %v872_v15 = vld [vmem:[#allocation5 + $0x100] sm:$0xff]  }
 0x229   :  { %876 = vrsqrt.f32 %v273_v16  ;;  %v873_v16 = vld [vmem:[#allocation5 + $0x108] sm:$0xff]  }
 0x233   :  { %v877_v18 = vpop.eup %876 }
 0x234   :  { %v275_v19 = vmul.f32 %v877_v18, %v272_v17  ;;  %v687_v17 = vld [vmem:[#allocation7 + $0x6] ss:$0 sm:$0xff] }
 0x236   :  { %v277_v21 = vmul.f32 %v275_v19, %v261_v11  ;;  %v282_v22 = vrot.slane %v275_v19, %v1056_v38 }
 0x238   :  { %v278_v23 = vsub.f32 %v276_v20, %v277_v21  ;;  %v283_v24 = vmul.f32 %v282_v22, %v249_v58 }
 0x23a   :  { %v287_v25 = vrot.slane %v278_v23, %v1056_v38 }
 0x23c   :  { %v288_v26 = vadd.f32 %v287_v25, %v283_v24 }
 0x23e   :  { %v289_v27 = vmax.f32 %v288_v26, 0.0 }
 0x240   :  { %v290_v28 = vpack.c.bf16 %v289_v27, %v289_v27 }
 0x242   :  { %789 = vmatmul.mubr.bf16.vlgmr.msra.gmra.mrb[4].mxu0 %v290_v28 }
 0x243   :  { %828 = vmatprep.mubr.msk.bf16.mxu0 %vm980_vm0, %v979_v0  ;;  %813 = vmatpush3.bf16.msra.mxu0 %v866_v37 }
 0x244   :  { %814 = vmatprep.subr.bf16.mxu0 %v979_v0 }
 0x247   :  { %815 = vmatpush3.bf16.msra.mxu0 %v867_v39 }
 0x248   :  { %816 = vmatprep.subr.bf16.mxu0 %v979_v0 }
 0x24b   :  { %817 = vmatpush3.bf16.msra.mxu0 %v868_v40 }
 0x24c   :  { %818 = vmatprep.subr.bf16.mxu0 %v979_v0 }
 0x24f   :  { %819 = vmatpush3.bf16.msra.mxu0 %v869_v41 }
 0x250   :  { %820 = vmatprep.subr.bf16.mxu0 %v979_v0 }
 0x253   :  { %821 = vmatpush3.bf16.msra.mxu0 %v870_v42 }
 0x254   :  { %822 = vmatprep.subr.bf16.mxu0 %v979_v0 }
 0x257   :  { %823 = vmatpush3.bf16.msra.mxu0 %v871_v43 }
 0x258   :  { %824 = vmatprep.subr.bf16.mxu0 %v979_v0 }
 0x25b   :  { %825 = vmatpush3.bf16.msra.mxu0 %v872_v15 }
 0x25c   :  { %826 = vmatprep.subr.bf16.mxu0 %v979_v0 }
 0x25f   :  { %827 = vmatpush3.bf16.msra.mxu0 %v873_v16 }
 0x315   :  { %v389_v44 = vpop.f32.mrb[4].mxu0 }
 0x316   :  { %v395_v45 = vrot.slane %v389_v44, 4  ;;  %v402_v46 = vmul.f32 %v389_v44, %v389_v44  ;;  %v790_v47 = vpop.f32.mrb[5].mxu0 }
 0x317   :  { %v392_v48 = vpop.f32.mrb[6].mxu0 }
 0x318   :  { %v396_v49 = vadd.f32 %v395_v45, %v389_v44  ;;  %v403_v50 = vrot.slane %v402_v46, 4  ;;  %v791_v51 = vpop.f32.mrb[7].mxu0 }
 0x31a   :  { %v397_v52 = vrot.slane %v396_v49, 2  ;;  %v404_v53 = vadd.f32 %v403_v50, %v402_v46 }
 0x31c   :  { %v398_v54 = vadd.f32 %v397_v52, %v396_v49  ;;  %v405_v55 = vrot.slane %v404_v53, 2 }
 0x31e   :  { %v399_v56 = vrot.slane %v398_v54, 1  ;;  %v406_v57 = vadd.f32 %v405_v55, %v404_v53 }
 0x320   :  { %v400_v58 = vadd.f32 %v399_v56, %v398_v54  ;;  %v407_v59 = vrot.slane %v406_v57, 1 }
 0x322   :  { %v401_v60 = vmul.f32 0.125, %v400_v58  ;;  %v408_v61 = vadd.f32 %v407_v59, %v406_v57 }
 0x324   :  { %v409_v62 = vmul.f32 0.125, %v408_v61  ;;  %v410_v63 = vmul.f32 %v401_v60, %v401_v60 }
 0x326   :  { %v411_v1 = vsub.f32 %v409_v62, %v410_v63 }
 0x328   :  { %v413_v2 = vadd.f32 1e-05, %v411_v1 }
 0x32a   :  { %878 = vrsqrt.f32 %v413_v2 }
 0x334   :  { %v879_v4 = vpop.eup %878 }
 0x335   :  { %v415_v5 = vmul.f32 %v879_v4, %v412_v3 }
 0x337   :  { %v417_v7 = vmul.f32 %v415_v5, %v401_v60  ;;  %v422_v8 = vrot.slane %v415_v5, %v1056_v38 }
 0x339   :  { %v418_v9 = vsub.f32 %v416_v6, %v417_v7  ;;  %v423_v10 = vmul.f32 %v422_v8, %v389_v44 }
 0x33b   :  { %v427_v11 = vrot.slane %v418_v9, %v1056_v38  ;;  %v696_v38 = vld [vmem:[#allocation7 + $0x7] ss:$0 sm:$0xff] }
 0x33d   :  { %v428_v12 = vadd.f32 %v427_v11, %v423_v10 }
 0x33f   :  { %v429_v13 = vmax.f32 %v428_v12, 0.0 }
 0x341   :  { %v430_v14 = vpack.c.bf16 %v429_v13, %v429_v13 }
 0x343   :  { %809 = vmatmul.mubr.bf16.vlgmr.msra.gmra.mrb[4].mxu1 %v430_v14 }
 0x416   :  { %v534_v18 = vpop.f32.mrb[4].mxu1 }
 0x417   :  { %v535_v19 = vadd.f32 %v687_v17, %v534_v18  ;;  %v810_v20 = vpop.f32.mrb[5].mxu1 }
 0x418   :  { %v537_v21 = vpop.f32.mrb[6].mxu1 }
 0x419   :  { %v540_v22 = vmax.f32 %v535_v19, 0.0  ;;  %v811_v23 = vpop.f32.mrb[7].mxu1 }
 0x41b   :  { %v541_v24 = vpack.c.bf16 %v540_v22, %v540_v22 }
 0x41d   :  { %829 = vmatmul.mubr.bf16.vlgmr.msra.gmra.mrb[8].mxu0 %v541_v24 }
 0x4f0   :  { %v645_v25 = vpop.f32.mrb[8].mxu0 }
 0x4f1   :  { %v646_v26 = vadd.f32 %v696_v38, %v645_v25  ;;  %v830_v27 = vpop.f32.mrb[9].mxu0 }
 0x4f2   :  { %v648_v28 = vpop.f32.mrb[10].mxu0 }
 0x4f3   :  { %651 = vst [vmem:[#allocation8] sm:$0xff] %v646_v26  ;;  %v831_v0 = vpop.f32.mrb[11].mxu0 }
 0x4f4   :  { %957 = shalt.err (!%p954_p0)
}
 0x4f5   :  { %s958_s25 = scalar_lea.hbm %s1105_s3, 128 }
 0x4f6   :  { %p959_p1 = scmp.ne.s32.totalorder %s1105_s3, %s958_s25  ;;  %p962_p2 = scmp.lt.u32.totalorder %s958_s25, %s1105_s3 }
 0x4f8   :  { %p964_p3 = pnand %p962_p2, %p959_p1 }
 0x4fa   :  { %967 = shalt.err (!%p964_p3)
}
 0x4fb   :  { %661 = dma.vmem_to_hbm [thread:$0]  %s659_s21, 128, %s1105_s3, [#allocation4]  }
 0x4fc   :  { %972 = dma.done.wait [#allocation4], 128  }
 0x4fd   :  { %973 = vsyncadd [#allocation4], 4294967168 }
 0x4fe   :  { %665 = vsyncpa [#allocation3], 1 }
 0x4ff   :  { %666 = vsyncpa [#allocation6], 1 }
 0x500   :  { %667 = vsyncpa [#allocation4], 1 }

</bundles_post_ra>
